<compile_context>
chip_gen: v7x
topology: tpu7x:2x2x1
jax: 0.10.0
libtpu: 0.0.40
codegen_flags: <defaults>
</compile_context>

<pallas_src>
import functools
import math

import jax
import jax.numpy as jnp
from jax.experimental import pallas as pl
from jax.experimental.pallas import tpu as pltpu

_LANE = 128


def _round_up(x, m):
    return ((x + m - 1) // m) * m


def _cdiv(a, b):
    return -(-a // b)


def _vmem_capacity_bytes():
    try:
        info = pltpu.get_tpu_info()
        cap = getattr(info, "vmem_capacity_bytes", None)
        if cap:
            return int(cap)
    except Exception:
        pass
    return 64 * 1024 * 1024  # conservative default (v7x per-core VMEM)


def _plan(c1, c2, cout, hw, itemsize):
    """Pick (variant, tile_m, padded_hw, vmem_limit) based on the chip's VMEM."""
    cap = _vmem_capacity_bytes()
    usable = int(cap * 0.7)
    cin = c1 + c2
    hwp = _round_up(hw, _LANE)
    weights = cout * (cin + 2) * itemsize + cout * _LANE * 4

    def fused_fp(tm):
        hwt = _cdiv(hw, tm) * tm
        fp = 2 * cin * tm * itemsize          # double-buffered input tiles
        fp += 2 * cout * hwt * itemsize       # double-buffered resident output
        fp += cout * hwt * itemsize           # in-place rescale temporary
        fp += 3 * cout * tm * 4               # f32 acc / feat / mask temps
        fp += weights
        return fp, hwt

    def recompute_fp(tm):
        fp = 2 * cin * tm * itemsize
        fp += 2 * cout * tm * itemsize
        fp += 3 * cout * tm * 4
        fp += weights
        return fp

    tiles = (2048, 1024, 512, 256, 128)
    for tm in tiles:
        if tm > hwp:
            continue
        fp, hwt = fused_fp(tm)
        if fp <= usable:
            vlim = int(min(cap, max(fp + (8 << 20), 32 << 20)))
            return "fused", tm, hwt, vlim
    for tm in tiles:
        if tm > hwp:
            continue
        fp = recompute_fp(tm)
        if fp <= usable:
            vlim = int(min(cap, max(fp + (8 << 20), 32 << 20)))
            return "recompute", tm, _cdiv(hw, tm) * tm, vlim
    return "recompute", 128, _cdiv(hw, 128) * 128, cap


def _conv_bn_relu(x1_ref, x2_ref, w1a_ref, w1b_ref, bias_ref, *, hw, tm, t):
    """feat = relu(W1a@x1 + W1b@x2 + bias) for one spatial tile, f32."""
    # 1x1 conv == channel matmul; concat fused by splitting W1; BN folded into
    # W1/bias by the wrapper.  Native-dtype operands, f32 MXU accumulation.
    # (Two matmuls with K=C1/K=C2; memory-bound at production channel counts,
    #  so the extra MXU pipeline fill for small K is not worth a VMEM concat.)
    acc = jnp.dot(w1a_ref[...], x1_ref[...], preferred_element_type=jnp.float32)
    acc = acc + jnp.dot(w1b_ref[...], x2_ref[...], preferred_element_type=jnp.float32)
    feat = jnp.maximum(acc + bias_ref[...], 0.0)                  # (Cout, TM)
    if hw % tm != 0:
        # Ragged last tile: zero the out-of-range columns so they poison
        # neither the channel sums nor the (padded) output.  (1, TM) row iota
        # broadcast against feat; zero cost in the common divisible case.
        col = t * tm + jax.lax.broadcasted_iota(jnp.int32, (1, tm), 1)
        feat = jnp.where(col < hw, feat, 0.0)
    return feat


# ---------------------------------------------------------------------------
# Preferred variant: single kernel, feat lives only in the resident out block.
# ---------------------------------------------------------------------------
def _fused_kernel(x1_ref, x2_ref, w1a_ref, w1b_ref, bias_ref, w2_ref, w3_ref,
                  out_ref, sums_ref, *, hw, tm):
    t = pl.program_id(1)
    n_t = pl.num_programs(1)

    @pl.when(t == 0)
    def _():
        sums_ref[...] = jnp.zeros_like(sums_ref)

    feat = _conv_bn_relu(x1_ref, x2_ref, w1a_ref, w1b_ref, bias_ref,
                         hw=hw, tm=tm, t=t)

    # Stash the unscaled tile straight into the whole-image, VMEM-resident
    # output block (no feat HBM round trip); rescaled in place on the last tile.
    col0 = pl.multiple_of(t * tm, tm)
    out_ref[:, pl.ds(col0, tm)] = feat.astype(out_ref.dtype)

    s = jnp.sum(feat, axis=-1, keepdims=True)                      # (Cout, 1)
    sums_ref[...] += jnp.broadcast_to(s, sums_ref.shape)

    @pl.when(t == n_t - 1)
    def _():
        # Squeeze-excite attention, once per image (hoisted out of the tile loop).
        mean = sums_ref[...] * (1.0 / hw)                          # (Cout, 128)
        h = jnp.maximum(
            jnp.dot(w2_ref[...], mean, preferred_element_type=jnp.float32), 0.0)
        a = jnp.dot(w3_ref[...], h, preferred_element_type=jnp.float32)
        # sigmoid via EUP exp; saturates to 0/1 for large |a| (no NaN).
        atten = 1.0 / (1.0 + jnp.exp(-a[:, 0:1]))                  # (Cout, 1)
        factor = (1.0 + atten).astype(out_ref.dtype)
        out_ref[...] = out_ref[...] * factor                       # feat*atten + feat


def _fused_call(x1, x2, w1a, w1b, bias, w2m, w3m, *, hw, tm, hwt, vlim):
    n, c1, _ = x1.shape
    c2 = x2.shape[1]
    cout = w1a.shape[0]
    t_blocks = hwt // tm
    dtype = x1.dtype
    kern = functools.partial(_fused_kernel, hw=hw, tm=tm)
    return pl.pallas_call(
        kern,
        out_shape=jax.ShapeDtypeStruct((n, cout, hwt), dtype),
        grid=(n, t_blocks),
        in_specs=[
            pl.BlockSpec((None, c1, tm), lambda i, j: (i, 0, j)),
            pl.BlockSpec((None, c2, tm), lambda i, j: (i, 0, j)),
            pl.BlockSpec((cout, c1), lambda i, j: (0, 0)),
            pl.BlockSpec((cout, c2), lambda i, j: (0, 0)),
            pl.BlockSpec((cout, 1), lambda i, j: (0, 0)),
            pl.BlockSpec(w2m.shape, lambda i, j: (0, 0)),
            pl.BlockSpec(w3m.shape, lambda i, j: (0, 0)),
        ],
        out_specs=pl.BlockSpec((None, cout, hwt), lambda i, j: (i, 0, 0)),
        scratch_shapes=[pltpu.VMEM((cout, _LANE), jnp.float32)],
        compiler_params=pltpu.CompilerParams(
            dimension_semantics=("parallel", "arbitrary"),
            vmem_limit_bytes=vlim),
    )(x1, x2, w1a, w1b, bias, w2m, w3m)


# ---------------------------------------------------------------------------
# Fallback variant: feat never stored anywhere; recomputed in the scale pass.
# ---------------------------------------------------------------------------
def _sums_kernel(x1_ref, x2_ref, w1a_ref, w1b_ref, bias_ref, sums_ref, *, hw, tm):
    t = pl.program_id(1)

    @pl.when(t == 0)
    def _():
        sums_ref[...] = jnp.zeros_like(sums_ref)

    feat = _conv_bn_relu(x1_ref, x2_ref, w1a_ref, w1b_ref, bias_ref,
                         hw=hw, tm=tm, t=t)
    s = jnp.sum(feat, axis=-1, keepdims=True)
    sums_ref[...] += jnp.broadcast_to(s, sums_ref.shape)


def _scale_kernel(x1_ref, x2_ref, w1a_ref, w1b_ref, bias_ref, factor_ref,
                  out_ref, *, hw, tm):
    t = pl.program_id(1)
    feat = _conv_bn_relu(x1_ref, x2_ref, w1a_ref, w1b_ref, bias_ref,
                         hw=hw, tm=tm, t=t)
    out_ref[...] = (feat * factor_ref[...]).astype(out_ref.dtype)


def _recompute_call(x1, x2, w1a, w1b, bias, w2_2d, w3_2d, *, hw, tm, hwt, vlim):
    n, c1, _ = x1.shape
    c2 = x2.shape[1]
    cout = w1a.shape[0]
    t_blocks = hwt // tm
    dtype = x1.dtype

    x_specs = [
        pl.BlockSpec((None, c1, tm), lambda i, j: (i, 0, j)),
        pl.BlockSpec((None, c2, tm), lambda i, j: (i, 0, j)),
        pl.BlockSpec((cout, c1), lambda i, j: (0, 0)),
        pl.BlockSpec((cout, c2), lambda i, j: (0, 0)),
        pl.BlockSpec((cout, 1), lambda i, j: (0, 0)),
    ]

    sums = pl.pallas_call(
        functools.partial(_sums_kernel, hw=hw, tm=tm),
        out_shape=jax.ShapeDtypeStruct((n, cout, _LANE), jnp.float32),
        grid=(n, t_blocks),
        in_specs=x_specs,
        out_specs=pl.BlockSpec((None, cout, _LANE), lambda i, j: (i, 0, 0)),
        compiler_params=pltpu.CompilerParams(
            dimension_semantics=("parallel", "arbitrary"),
            vmem_limit_bytes=vlim),
    )(x1, x2, w1a, w1b, bias)

    # Tiny attention MLP, once per image, hoisted out of the per-tile body.
    mean = sums[:, :, 0] * (1.0 / hw)                              # (N, Cout)
    h = jnp.maximum(mean @ w2_2d.T, 0.0)                           # (N, Cmid)
    a = h @ w3_2d.T                                                # (N, Cout)
    factor = (1.0 + jax.nn.sigmoid(a))[:, :, None].astype(jnp.float32)

    out = pl.pallas_call(
        functools.partial(_scale_kernel, hw=hw, tm=tm),
        out_shape=jax.ShapeDtypeStruct((n, cout, hwt), dtype),
        grid=(n, t_blocks),
        in_specs=x_specs + [pl.BlockSpec((None, cout, 1), lambda i, j: (i, 0, 0))],
        out_specs=pl.BlockSpec((None, cout, tm), lambda i, j: (i, 0, j)),
        compiler_params=pltpu.CompilerParams(
            dimension_semantics=("parallel", "parallel"),
            vmem_limit_bytes=vlim),
    )(x1, x2, w1a, w1b, bias, factor)
    return out


def feature_fusion_forward(fsp, fcp, w1, gamma, beta, running_mean, running_var,
                           w2, w3, *, eps=1e-5, variant=None):
    """FeatureFusionModule forward.  fsp/fcp: [N, C, H, W] (PyTorch NCHW)."""
    N, C1, H, W = fsp.shape
    N2, C2, H2, W2_ = fcp.shape
    assert (N, H, W) == (N2, H2, W2_)
    Cout = w1.shape[0]
    Cin = C1 + C2
    assert w1.shape[1] == Cin
    Cmid = w2.shape[0]

    dtype = fsp.dtype
    HW = H * W

    plan_variant, TM, HWt, vlim = _plan(C1, C2, Cout, HW, jnp.dtype(dtype).itemsize)
    if variant is not None:
        plan_variant = variant

    # NCHW kept: channels in sublanes, spatial flattened into lanes (no wrapper
    # pad / transpose / concat HBM passes; ragged tails handled in-kernel).
    x1 = fsp.reshape(N, C1, HW)
    x2 = fcp.reshape(N, C2, HW)

    # Fold inference-mode BatchNorm into the conv weight; kernel adds the bias.
    scale = gamma / jnp.sqrt(running_var + eps)                    # (Cout,)
    bias = (beta - running_mean * scale).reshape(Cout, 1).astype(jnp.float32)
    w1m = (w1.reshape(Cout, Cin) * scale[:, None]).astype(dtype)
    w1a = w1m[:, :C1]
    w1b = w1m[:, C1:]

    w2_2d = w2.reshape(Cmid, Cout).astype(jnp.float32)
    w3_2d = w3.reshape(Cout, Cmid).astype(jnp.float32)

    if plan_variant == "fused":
        # Attention MLP weights live in the kernel; pad the tiny mid dim to a
        # sublane multiple (zero rows/cols are exact through relu/matmul).
        Cmidp = _round_up(Cmid, 8)
        w2m = jnp.zeros((Cmidp, Cout), jnp.float32).at[:Cmid].set(w2_2d)
        w3m = jnp.zeros((Cout, Cmidp), jnp.float32).at[:, :Cmid].set(w3_2d)
        out = _fused_call(x1, x2, w1a, w1b, bias, w2m, w3m,
                          hw=HW, tm=TM, hwt=HWt, vlim=vlim)
    else:
        out = _recompute_call(x1, x2, w1a, w1b, bias, w2_2d, w3_2d,
                              hw=HW, tm=TM, hwt=HWt, vlim=vlim)

    if HWt != HW:
        out = out[:, :, :HW]   # no-op (elided) in the common divisible case
    return out.reshape(N, Cout, H, W)


def _reference(fsp, fcp, w1, gamma, beta, running_mean, running_var, w2, w3, eps=1e-5):
    dn = ("NCHW", "OIHW", "NCHW")
    fcat = jnp.concatenate([fsp, fcp], axis=1)
    y = jax.lax.conv_general_dilated(fcat, w1, (1, 1), "VALID", dimension_numbers=dn)
    scale = (gamma / jnp.sqrt(running_var + eps)).reshape(1, -1, 1, 1)
    bias = (beta - running_mean * gamma / jnp.sqrt(running_var + eps)).reshape(1, -1, 1, 1)
    feat = jnp.maximum(y * scale + bias, 0.0)
    atten = jnp.mean(feat, axis=(2, 3), keepdims=True)
    atten = jax.lax.conv_general_dilated(atten, w2, (1, 1), "VALID", dimension_numbers=dn)
    atten = jnp.maximum(atten, 0.0)
    atten = jax.lax.conv_general_dilated(atten, w3, (1, 1), "VALID", dimension_numbers=dn)
    atten = jax.nn.sigmoid(atten)
    return feat * atten + feat


if __name__ == "__main__":
    key = jax.random.PRNGKey(0)
    k1, k2, k3, k4, k5 = jax.random.split(key, 5)

    N, C1, C2, H, W = 2, 4, 4, 16, 16
    in_chan = C1 + C2
    out_chan = 8
    mid_chan = out_chan // 4

    fsp = jax.random.normal(k1, (N, C1, H, W), jnp.float32)
    fcp = jax.random.normal(k2, (N, C2, H, W), jnp.float32)

    # Conv2d weights, kaiming_normal_(a=1): std = sqrt(2/(1+1^2)) / sqrt(fan_in)
    w1 = jax.random.normal(k3, (out_chan, in_chan, 1, 1), jnp.float32) / math.sqrt(in_chan)
    w2 = jax.random.normal(k4, (mid_chan, out_chan, 1, 1), jnp.float32) / math.sqrt(out_chan)
    w3 = jax.random.normal(k5, (out_chan, mid_chan, 1, 1), jnp.float32) / math.sqrt(mid_chan)

    # BatchNorm2d defaults: gamma=1, beta=0, running_mean=0, running_var=1
    gamma = jnp.ones((out_chan,), jnp.float32)
    beta = jnp.zeros((out_chan,), jnp.float32)
    running_mean = jnp.zeros((out_chan,), jnp.float32)
    running_var = jnp.ones((out_chan,), jnp.float32)

    ref = _reference(fsp, fcp, w1, gamma, beta, running_mean, running_var, w2, w3)

    # Primary (planner-selected, fused) variant.
    out = feature_fusion_forward(fsp, fcp, w1, gamma, beta, running_mean,
                                 running_var, w2, w3)
    out = jax.block_until_ready(out)
    assert out.shape == (N, out_chan, H, W)
    err = jnp.max(jnp.abs(out - ref))
    assert jnp.allclose(out, ref, rtol=1e-4, atol=1e-4), f"fused max abs err {err}"

    # VMEM-fallback (recompute) variant, exercised explicitly for coverage.
    out2 = feature_fusion_forward(fsp, fcp, w1, gamma, beta, running_mean,
                                  running_var, w2, w3, variant="recompute")
    out2 = jax.block_until_ready(out2)
    err2 = jnp.max(jnp.abs(out2 - ref))
    assert jnp.allclose(out2, ref, rtol=1e-4, atol=1e-4), f"recompute max abs err {err2}"

    print("KERNEL_OK")
</pallas_src>

<mosaic_0001>
module attributes {stable_mosaic.version = 11 : i64} {
  func.func @_fused_kernel(%arg0: i32, %arg1: i32, %arg2: memref<1x4x256xf32, #tpu.memory_space<vmem>>, %arg3: memref<1x4x256xf32, #tpu.memory_space<vmem>>, %arg4: memref<8x4xf32, #tpu.memory_space<vmem>>, %arg5: memref<8x4xf32, #tpu.memory_space<vmem>>, %arg6: memref<8x1xf32, #tpu.memory_space<vmem>>, %arg7: memref<8x8xf32, #tpu.memory_space<vmem>>, %arg8: memref<8x8xf32, #tpu.memory_space<vmem>>, %arg9: memref<1x8x256xf32, #tpu.memory_space<vmem>>, %arg10: memref<8x128xf32, #tpu.memory_space<vmem>>) attributes {dimension_semantics = [#tpu.dimension_semantics<parallel>, #tpu.dimension_semantics<arbitrary>], iteration_bounds = array<i64: 2, 1>, scalar_prefetch = 0 : i64, scratch_operands = 1 : i64, tpu.core_type = #tpu.core_type<tc>, window_params = [{transform_indices = @transform_0, window_bounds = array<i64: 1, 4, 256>}, {transform_indices = @transform_1, window_bounds = array<i64: 1, 4, 256>}, {pipeline_mode = #tpu.pipeline_mode<synchronous>, transform_indices = @transform_2, window_bounds = array<i64: 8, 4>}, {pipeline_mode = #tpu.pipeline_mode<synchronous>, transform_indices = @transform_3, window_bounds = array<i64: 8, 4>}, {pipeline_mode = #tpu.pipeline_mode<synchronous>, transform_indices = @transform_4, window_bounds = array<i64: 8, 1>}, {pipeline_mode = #tpu.pipeline_mode<synchronous>, transform_indices = @transform_5, window_bounds = array<i64: 8, 8>}, {pipeline_mode = #tpu.pipeline_mode<synchronous>, transform_indices = @transform_6, window_bounds = array<i64: 8, 8>}, {transform_indices = @transform_7, window_bounds = array<i64: 1, 8, 256>}]} {
    %c0_i32 = arith.constant 0 : i32
    %0 = arith.cmpi eq, %arg1, %c0_i32 : i32
    %1 = arith.extui %0 : i1 to i32
    %c0_i32_0 = arith.constant 0 : i32
    %2 = arith.cmpi ne, %1, %c0_i32_0 : i32
    scf.if %2 {
      %cst_23 = arith.constant 0.000000e+00 : f32
      %33 = vector.broadcast %cst_23 : f32 to vector<8x128xf32>
      %c0_24 = arith.constant 0 : index
      %c0_25 = arith.constant 0 : index
      %34 = vector.load %arg10[%c0_24, %c0_25] : memref<8x128xf32, #tpu.memory_space<vmem>>, vector<8x128xf32>
      tpu.vector_store %arg10[%c0_24, %c0_25], %33 {strides = array<i32>} : memref<8x128xf32, #tpu.memory_space<vmem>>, vector<8x128xf32>,
    } else {
    }
    %c0 = arith.constant 0 : index
    %c0_1 = arith.constant 0 : index
    %3 = vector.load %arg4[%c0, %c0_1] : memref<8x4xf32, #tpu.memory_space<vmem>>, vector<8x4xf32>
    %c0_2 = arith.constant 0 : index
    %c0_3 = arith.constant 0 : index
    %c0_4 = arith.constant 0 : index
    %4 = vector.load %arg2[%c0_2, %c0_3, %c0_4] : memref<1x4x256xf32, #tpu.memory_space<vmem>>, vector<1x4x256xf32>
    %5 = vector.shape_cast %4 : vector<1x4x256xf32> to vector<4x256xf32>
    %cst = arith.constant dense<0.000000e+00> : vector<8x256xf32>
    %6 = tpu.matmul %3, %5, %cst {dimension_numbers = #tpu.dot_dimension_numbers<[1], [0], [0], [1], [0, 0, 1, 1], [], []>} : vector<8x4xf32>, vector<4x256xf32>, vector<8x256xf32> -> vector<8x256xf32>
    %c0_5 = arith.constant 0 : index
    %c0_6 = arith.constant 0 : index
    %7 = vector.load %arg5[%c0_5, %c0_6] : memref<8x4xf32, #tpu.memory_space<vmem>>, vector<8x4xf32>
    %c0_7 = arith.constant 0 : index
    %c0_8 = arith.constant 0 : index
    %c0_9 = arith.constant 0 : index
    %8 = vector.load %arg3[%c0_7, %c0_8, %c0_9] : memref<1x4x256xf32, #tpu.memory_space<vmem>>, vector<1x4x256xf32>
    %9 = vector.shape_cast %8 : vector<1x4x256xf32> to vector<4x256xf32>
    %cst_10 = arith.constant dense<0.000000e+00> : vector<8x256xf32>
    %10 = tpu.matmul %7, %9, %cst_10 {dimension_numbers = #tpu.dot_dimension_numbers<[1], [0], [0], [1], [0, 0, 1, 1], [], []>} : vector<8x4xf32>, vector<4x256xf32>, vector<8x256xf32> -> vector<8x256xf32>
    %11 = arith.addf %6, %10 : vector<8x256xf32>
    %c0_11 = arith.constant 0 : index
    %c0_12 = arith.constant 0 : index
    %12 = vector.load %arg6[%c0_11, %c0_12] : memref<8x1xf32, #tpu.memory_space<vmem>>, vector<8x1xf32>
    %13 = vector.broadcast %12 : vector<8x1xf32> to vector<8x256xf32>
    %14 = arith.addf %11, %13 : vector<8x256xf32>
    %cst_13 = arith.constant 0.000000e+00 : f32
    %15 = vector.broadcast %cst_13 : f32 to vector<8x256xf32>
    %16 = arith.maximumf %14, %15 : vector<8x256xf32>
    %c256_i32 = arith.constant 256 : i32
    %17 = arith.muli %arg1, %c256_i32 : i32
    %18 = tpu.assume_multiple %17, 256 : i32
    %c0_14 = arith.constant 0 : index
    %c0_15 = arith.constant 0 : index
    %19 = arith.index_cast %18 : i32 to index
    %20 = vector.load %arg9[%c0_14, %c0_15, %19] : memref<1x8x256xf32, #tpu.memory_space<vmem>>, vector<1x8x256xf32>
    %21 = vector.shape_cast %20 : vector<1x8x256xf32> to vector<8x256xf32>
    %22 = vector.shape_cast %16 : vector<8x256xf32> to vector<1x8x256xf32>
    tpu.vector_store %arg9[%c0_14, %c0_15, %19], %22 {strides = array<i32>} : memref<1x8x256xf32, #tpu.memory_space<vmem>>, vector<1x8x256xf32>,
    %cst_16 = arith.constant dense<0.000000e+00> : vector<8xf32>
    %23 = vector.multi_reduction <add>, %16, %cst_16 [1] : vector<8x256xf32> to vector<8xf32>
    %24 = vector.shape_cast %23 : vector<8xf32> to vector<8x1xf32>
    %c0_17 = arith.constant 0 : index
    %c0_18 = arith.constant 0 : index
    %25 = vector.load %arg10[%c0_17, %c0_18] : memref<8x128xf32, #tpu.memory_space<vmem>>, vector<8x128xf32>
    %26 = vector.shape_cast %24 : vector<8x1xf32> to vector<8x1xf32>
    %27 = vector.broadcast %26 : vector<8x1xf32> to vector<8x128xf32>
    %28 = arith.addf %25, %27 : vector<8x128xf32>
    %c0_19 = arith.constant 0 : index
    %c0_20 = arith.constant 0 : index
    %29 = vector.load %arg10[%c0_19, %c0_20] : memref<8x128xf32, #tpu.memory_space<vmem>>, vector<8x128xf32>
    tpu.vector_store %arg10[%c0_19, %c0_20], %28 {strides = array<i32>} : memref<8x128xf32, #tpu.memory_space<vmem>>, vector<8x128xf32>,
    %c0_i32_21 = arith.constant 0 : i32
    %30 = arith.cmpi eq, %arg1, %c0_i32_21 : i32
    %31 = arith.extui %30 : i1 to i32
    %c0_i32_22 = arith.constant 0 : i32
    %32 = arith.cmpi ne, %31, %c0_i32_22 : i32
    scf.if %32 {
      %c0_23 = arith.constant 0 : index
      %c0_24 = arith.constant 0 : index
      %33 = vector.load %arg10[%c0_23, %c0_24] : memref<8x128xf32, #tpu.memory_space<vmem>>, vector<8x128xf32>
      %cst_25 = arith.constant 3.906250e-03 : f32
      %34 = vector.broadcast %cst_25 : f32 to vector<8x128xf32>
      %35 = arith.mulf %33, %34 : vector<8x128xf32>
      %c0_26 = arith.constant 0 : index
      %c0_27 = arith.constant 0 : index
      %36 = vector.load %arg7[%c0_26, %c0_27] : memref<8x8xf32, #tpu.memory_space<vmem>>, vector<8x8xf32>
      %cst_28 = arith.constant dense<0.000000e+00> : vector<8x128xf32>
      %37 = tpu.matmul %36, %35, %cst_28 {dimension_numbers = #tpu.dot_dimension_numbers<[1], [0], [0], [1], [0, 0, 1, 1], [], []>} : vector<8x8xf32>, vector<8x128xf32>, vector<8x128xf32> -> vector<8x128xf32>
      %cst_29 = arith.constant 0.000000e+00 : f32
      %38 = vector.broadcast %cst_29 : f32 to vector<8x128xf32>
      %39 = arith.maximumf %37, %38 : vector<8x128xf32>
      %c0_30 = arith.constant 0 : index
      %c0_31 = arith.constant 0 : index
      %40 = vector.load %arg8[%c0_30, %c0_31] : memref<8x8xf32, #tpu.memory_space<vmem>>, vector<8x8xf32>
      %cst_32 = arith.constant dense<0.000000e+00> : vector<8x128xf32>
      %41 = tpu.matmul %40, %39, %cst_32 {dimension_numbers = #tpu.dot_dimension_numbers<[1], [0], [0], [1], [0, 0, 1, 1], [], []>} : vector<8x8xf32>, vector<8x128xf32>, vector<8x128xf32> -> vector<8x128xf32>
      %42 = vector.extract_strided_slice %41 {offsets = [0, 0], sizes = [8, 1], strides = [1, 1]} : vector<8x128xf32> to vector<8x1xf32>
      %cst_33 = arith.constant 0.000000e+00 : f32
      %43 = vector.broadcast %cst_33 : f32 to vector<8x1xf32>
      %44 = arith.subf %43, %42 : vector<8x1xf32>
      %45 = math.exp %44 : vector<8x1xf32>
      %cst_34 = arith.constant 1.000000e+00 : f32
      %46 = vector.broadcast %cst_34 : f32 to vector<8x1xf32>
      %47 = arith.addf %46, %45 : vector<8x1xf32>
      %cst_35 = arith.constant 1.000000e+00 : f32
      %48 = vector.broadcast %cst_35 : f32 to vector<8x1xf32>
      %49 = arith.divf %48, %47 : vector<8x1xf32>
      %cst_36 = arith.constant 1.000000e+00 : f32
      %50 = vector.broadcast %cst_36 : f32 to vector<8x1xf32>
      %51 = arith.addf %50, %49 : vector<8x1xf32>
      %c0_37 = arith.constant 0 : index
      %c0_38 = arith.constant 0 : index
      %c0_39 = arith.constant 0 : index
      %52 = vector.load %arg9[%c0_37, %c0_38, %c0_39] : memref<1x8x256xf32, #tpu.memory_space<vmem>>, vector<1x8x256xf32>
      %53 = vector.shape_cast %52 : vector<1x8x256xf32> to vector<8x256xf32>
      %54 = vector.broadcast %51 : vector<8x1xf32> to vector<8x256xf32>
      %55 = arith.mulf %53, %54 : vector<8x256xf32>
      %c0_40 = arith.constant 0 : index
      %c0_41 = arith.constant 0 : index
      %c0_42 = arith.constant 0 : index
      %56 = vector.load %arg9[%c0_40, %c0_41, %c0_42] : memref<1x8x256xf32, #tpu.memory_space<vmem>>, vector<1x8x256xf32>
      %57 = vector.shape_cast %56 : vector<1x8x256xf32> to vector<8x256xf32>
      %58 = vector.shape_cast %55 : vector<8x256xf32> to vector<1x8x256xf32>
      tpu.vector_store %arg9[%c0_40, %c0_41, %c0_42], %58 {strides = array<i32>} : memref<1x8x256xf32, #tpu.memory_space<vmem>>, vector<1x8x256xf32>,
    } else {
    }
    return
  }
  func.func @transform_0(%arg0: i32, %arg1: i32) -> (i32, i32, i32) {
    %c0_i32 = arith.constant 0 : i32
    %c0_i32_0 = arith.constant 0 : i32
    return %arg0, %c0_i32, %arg1 : i32, i32, i32
  }
  func.func @transform_1(%arg0: i32, %arg1: i32) -> (i32, i32, i32) {
    %c0_i32 = arith.constant 0 : i32
    %c0_i32_0 = arith.constant 0 : i32
    return %arg0, %c0_i32, %arg1 : i32, i32, i32
  }
  func.func @transform_2(%arg0: i32, %arg1: i32) -> (i32, i32) {
    %c0_i32 = arith.constant 0 : i32
    %c0_i32_0 = arith.constant 0 : i32
    %c0_i32_1 = arith.constant 0 : i32
    return %c0_i32, %c0_i32_0 : i32, i32
  }
  func.func @transform_3(%arg0: i32, %arg1: i32) -> (i32, i32) {
    %c0_i32 = arith.constant 0 : i32
    %c0_i32_0 = arith.constant 0 : i32
    %c0_i32_1 = arith.constant 0 : i32
    return %c0_i32, %c0_i32_0 : i32, i32
  }
  func.func @transform_4(%arg0: i32, %arg1: i32) -> (i32, i32) {
    %c0_i32 = arith.constant 0 : i32
    %c0_i32_0 = arith.constant 0 : i32
    %c0_i32_1 = arith.constant 0 : i32
    return %c0_i32, %c0_i32_0 : i32, i32
  }
  func.func @transform_5(%arg0: i32, %arg1: i32) -> (i32, i32) {
    %c0_i32 = arith.constant 0 : i32
    %c0_i32_0 = arith.constant 0 : i32
    %c0_i32_1 = arith.constant 0 : i32
    return %c0_i32, %c0_i32_0 : i32, i32
  }
  func.func @transform_6(%arg0: i32, %arg1: i32) -> (i32, i32) {
    %c0_i32 = arith.constant 0 : i32
    %c0_i32_0 = arith.constant 0 : i32
    %c0_i32_1 = arith.constant 0 : i32
    return %c0_i32, %c0_i32_0 : i32, i32
  }
  func.func @transform_7(%arg0: i32, %arg1: i32) -> (i32, i32, i32) {
    %c0_i32 = arith.constant 0 : i32
    %c0_i32_0 = arith.constant 0 : i32
    %c0_i32_1 = arith.constant 0 : i32
    return %arg0, %c0_i32, %c0_i32_0 : i32, i32, i32
  }
}

</mosaic_0001>

<bundles_post_ra>
// kernel: tpu_custom_call.1
= control target key start
LH: loop header
LB: loop body
LE: loop exit
PB: predicated region body
PF: predicated region fallthrough
CT: control target
= control target key end

     0   :  { %12 = vsyncpa [#allocation4], 0  ;;  %s1178_s0 = inlined_call_operand.vmem [shape: f32[2,4,256], index: 0, kind: input, shape index: {}]   ;;  %s1179_s1 = inlined_call_operand.vmem [shape: f32[2,4,256], index: 1, kind: input, shape index: {}]   ;;  %s1180_s2 = inlined_call_operand.vmem [shape: f32[8,4], index: 2, kind: input, shape index: {}]   ;;  %s1181_s3 = inlined_call_operand.vmem [shape: f32[8,4], index: 3, kind: input, shape index: {}]   ;;  %s1182_s4 = inlined_call_operand.vmem [shape: f32[8,1], index: 4, kind: input, shape index: {}]   ;;  %s1183_s5 = inlined_call_operand.vmem [shape: f32[8,8], index: 5, kind: input, shape index: {}]   ;;  %s1184_s6 = inlined_call_operand.vmem [shape: f32[8,8], index: 6, kind: input, shape index: {}]   ;;  %s1185_s7 = inlined_call_operand.hbm [shape: f32[2,8,256], index: 7, kind: output, shape index: {}]  }
   0x1   :  { %14 = vsyncpa [#allocation4 + $0x1], 0  ;;  %s1048_s24 = smov 0   ;;  %s1050_s25 = smov 0  }
   0x2   :  { %s1052_s26 = smov 0   ;;  %s1054_s27 = smov 0  }
   0x3   :  { %s1056_s28 = smov 0   ;;  %s1058_s29 = smov 0  }
   0x4 LB: > { %s816_s30 = sadd.s32 4294967295, %s1002_s29   ;;  %s817_s8 = sadd.s32 4294967294, %s1002_s29   ;;  %s1002_s29 = sphi %s1058_s29, %s20_s29   ;;  %s998_s28 = sphi %s1056_s28, %s1192_s28   ;;  %s994_s27 = sphi %s1054_s27, %s1191_s27   ;;  %s990_s26 = sphi %s1052_s26, %s1190_s26   ;;  %s986_s25 = sphi %s1050_s25, %s1189_s25   ;;  %s982_s24 = sphi %s1048_s24, %s1188_s24  }
   0x5   : > { %s32_s9 = sadd.s32 1, %s998_s28  ;;  %s200_s10 = sadd.s32 1, %s990_s26 }
   0x6   : > { %p34_p0 = scmp.ge.s32.totalorder %s32_s9, 2  ;;  %p210_p1 = scmp.ne.s32.totalorder %s990_s26, %s986_s25 }
   0x7   : > { %p211_p2 = scmp.eq.s32.totalorder %s816_s30, 1  ;;  %p216_p3 = scmp.ne.s32.totalorder %s986_s25, %s982_s24 }
   0x8   : > { %s1194_s9 = smov (%p34_p0, %s32_s9), 0  ;;  %p217_p5 = scmp.eq.s32.totalorder %s817_s8, 1 }
   0x9   : > { %p1088_p4 = por %p211_p2, %p210_p1  ;;  %s197_s12 = ssub.s32 %s998_s28, %s1194_s9 }
   0xa   : > { %p820_p6 = scmp.ge.s32.totalorder %s1002_s29, 1  ;;  %p198_p7 = scmp.eq.s32.totalorder %s197_s12, 0 }
   0xb   : > { %p1095_p8 = por %p217_p5, %p216_p3  ;;  %p276_p9 = scmp.lt.s32.totalorder %s1002_s29, 3 }
   0xc   : > { %s1101_s14 = scalar_select %p198_p7, %s990_s26, %s200_s10  }
   0xd   : > { %p277_p10 = pnand %p820_p6, %p276_p9 }
   0xe   : > { %p322_p11 = scmp.lt.s32.totalorder (!%p277_p10), %s994_s27, 1  ;;  %v1004_v0 = vmov (!%p277_p10), 0.0   ;;  %v512_v1 = vld [vmem:[%s1182_s4] sm:$0xff] (!%p277_p10)  ;;  %v1005_v2 = vmov (!%p277_p10), 0   ;;  %vm356_vm0 = vcmask (!%p277_p10), 1043456   ;;  %vm352_vm1 = vcmask (!%p277_p10), 31744  }
   0xf   : > { %280 = sbr.rel (%p277_p10) target bundleno = 1005 (0x3ed), region = 48  ;;  %425 = vmatprep.mubr.f32.mxu0 (!%p277_p10), %v1004_v0  ;;  %846 = vmatprep.subr.mxu1 (!%p277_p10), %v1004_v0  ;;  %v348_v7 = vld [vmem:[%s1181_s3] sm:$0xff] (!%p277_p10)  ;;  %vm1006_vm2 = vmmov (!%p277_p10), 0   ;;  %vm541_vm3 = vcmask (!%p277_p10), 64512   ;;  %s318_s20 = sand.u32 (!%p277_p10), 1, %s986_s25  }
  0x10   : > { %916 = vset.pattern.permute.xlu0 (!%p277_p10), %v1005_v2  ;;  %917 = vset.pattern.permute.xlu1 (!%p277_p10), %v1005_v2  ;;  %v346_v8 = vld [vmem:[%s1180_s2] sm:$0xff] (!%p277_p10)  ;;  %s841_s22 = sshll.u32 (!%p277_p10), %s994_s27, 8  ;;  %s709_s15 = scalar_lea.sflag (!%p277_p10), [#allocation4], %s318_s20 }
  0x11   : > { %515 = vperm.xlu0 (!%p277_p10), %916, %v512_v1   ;;  %848 = vmatprep.mubr.msk.f32.mxu1 (!%p277_p10), %vm1006_vm2, %v1004_v0  ;;  %v540_v19 = vld [vmem:[%s1183_s5] sm:$0xff] (!%p277_p10)  ;;  %s1131_s12 = scalar_lea.hbm (!%p277_p10), %s1185_s7, %s841_s22 }
  0x12   : > { %v616_v23 = vld [vmem:[%s1184_s6] sm:$0xff] (!%p277_p10) }
  0x16   : > { %s323_s17 = scalar_select %p322_p11, %s994_s27, 1 }
  0x17   : > { %s1007_s27 = smov [#allocation3]  }
  0x18   : > { %s839_s18 = sshll.u32 %s323_s17, 3  ;;  %s928_s17 = sshll.u32 %s1007_s27, 4  ;;  %s929_s17 = int_to_ptr.vmem [resolvable:$false] %s928_s17 }
  0x19   : > { %s329_s21 = scalar_lea.vmem %s1178_s0, %s839_s18  ;;  %s339_s30 = scalar_lea.vmem %s1179_s1, %s839_s18 }
  0x1a   : > { %v347_v3 = vld [vmem:[%s329_s21] sm:$0xff]  ;;  %s821_s21 = sshll.u32 %s318_s20, 4  ;;  %s930_s18 = scalar_lea.vmem %s929_s17, 512 }
  0x1b   : > { %v349_v4 = vld [vmem:[%s339_s30] sm:$0xff]  ;;  %v433_v6 = vcombine.high %v347_v3, %v347_v3  ;;  %s320_s23 = scalar_lea.vmem [#allocation3], %s821_s21 }
  0x1c   : > { %v351_v5 = vcombine.high %v349_v4, %v349_v4  ;;  %s723_s30 = sshll.u32 %s320_s23, 4  ;;  %s1133_s30 = int_to_ptr.vmem [resolvable:$true] %s723_s30 }
  0x1d   : > { %s924_s16 = scalar_lea.vmem %s1133_s30, 256  ;;  %p931_p1 = scmp.lt.s32.totalorder %s1133_s30, %s929_s17 }
  0x1e   : > { %826 = vmatprep.subr.msk.mxu0 %vm356_vm0, %v351_v5  ;;  %p925_p12 = scmp.ne.s32.totalorder %s1133_s30, %s924_s16  ;;  %p932_p2 = scmp.lt.s32.totalorder %s930_s18, %s924_s16 }
  0x1f   : > { %827 = vmatpush1.msk.msra.mxu0 %vm356_vm0, %v349_v4 }
  0x20   : > { %828 = vmatmul.mubr.msk.f32.vlgmr.msra.gmra.mrb[0].mxu0 %vm352_vm1, %v348_v7  ;;  %829 = vmatprep.subr.msk.mxu0 %vm356_vm0, %v433_v6  ;;  %p926_p13 = pnand %p925_p12, %p1088_p4  ;;  %p933_p3 = por %p932_p2, %p931_p1 }
  0x21   : > { %830 = vmatpush1.msk.msra.mxu0 %vm356_vm0, %v347_v3  ;;  %505 = vmatprep.mubr.f32.mxu0 %v1004_v0 }
  0x22   : > { %p927_p0 = pneg %p926_p13 }
  0x24   : > { %p934_p5 = pnand %p933_p3, %p927_p0 }
  0x28   : > { %831 = vmatmul.mubr.msk.f32.vlgmr.msra.gmra.mrb[0].mxu0 %vm352_vm1, %v346_v8 }
  0x90   : > { %v516_v9 = vpop.permute.xlu0 %515 }
  0xfb   : > { %v507_v10 = vpop.f32.mrb[0].mxu0 }
  0xfc   : > { %v518_v11 = vadd.f32 %v516_v9, %v507_v10  ;;  %v509_v12 = vpop.f32.mrb[1].mxu0 }
  0xfd   : > { %v519_v13 = vadd.f32 %v516_v9, %v509_v12 }
  0xfe   : > { %v520_v14 = vmax.f32 %v518_v11, 0.0 }
  0xff   : > { %v521_v15 = vmax.f32 %v519_v13, 0.0 }
 0x101   : > { %v529_v16 = vadd.f32 %v521_v15, %v520_v14 }
 0x103   : > { %530 = vadd.xlane.f32.xlu0 %v529_v16 }
 0x190   : > { %v531_v17 = vpop.xlane.xlu0 %530 }
 0x191   : > { %v539_v18 = vmul.f32 0.00390625, %v531_v17 }
 0x193   : > { %847 = vmatpush3.msra.mxu1 %v539_v18 }
 0x194   : > { %849 = vmatmul.mubr.msk.f32.vlgmr.msra.gmra.mrb[0].mxu1 %vm541_vm3, %v540_v19  ;;  %851 = vmatprep.subr.mxu1 %v1004_v0 }
 0x195   : > { %853 = vmatprep.mubr.msk.f32.mxu1 %vm1006_vm2, %v1004_v0 }
 0x267   : > { %v611_v20 = vpop.f32.mrb[0].mxu1 }
 0x268   : > { %v615_v21 = vmax.f32 %v611_v20, 0.0  ;;  %v850_v22 = vpop.f32.mrb[1].mxu1 }
 0x26a   : > { %852 = vmatpush3.msra.mxu1 %v615_v21 }
 0x26b   : > { %854 = vmatmul.mubr.msk.f32.vlgmr.msra.gmra.mrb[2].mxu1 %vm541_vm3, %v616_v23 }
 0x33e   : > { %v686_v24 = vpop.f32.mrb[2].mxu1 }
 0x33f   : > { %v690_v25 = vsub.f32 0.0, %v686_v24  ;;  %v855_v26 = vpop.f32.mrb[3].mxu1 }
 0x341   : > { %v691_v27 = vmul.f32 1.442695, %v690_v25 }
 0x343   : > { %920 = vpow2.f32 %v691_v27 }
 0x34d   : > { %v921_v28 = vpop.eup %920 }
 0x34e   : > { %v693_v29 = vadd.f32 1.0, %v921_v28 }
 0x350   : > { %922 = vrcp.f32 %v693_v29 }
 0x35a   : > { %v923_v30 = vpop.eup %922 }
 0x35b   : > { %v696_v31 = vadd.f32 1.0, %v923_v30 }
 0x35d   : > { %701 = vperm.xlu1 %917, %v696_v31  }
 0x3dc   : > { %v702_v32 = vpop.permute.xlu1 %701 }
 0x3dd   : > { %v704_v33 = vmul.f32 %v702_v32, %v520_v14  ;;  %v705_v34 = vmul.f32 %v702_v32, %v521_v15 }
 0x3df   : > { %706 = vst [vmem:[%s320_s23] sm:$0xff] %v704_v33  ;;  %707 = vst [vmem:[%s320_s23 + $0x8] sm:$0xff] %v705_v34 }
 0x3e0   : > { %937 = shalt.err (!%p934_p5)
}
 0x3e1   : > { %s938_s19 = scalar_lea.hbm %s1131_s12, 256  ;;  %s942_s22 = scalar_lea.hbm %s1185_s7, 512 }
 0x3e2   : > { %p939_p6 = scmp.ne.s32.totalorder %s1131_s12, %s938_s19  ;;  %p943_p10 = scmp.lt.u32.totalorder %s1131_s12, %s1185_s7 }
 0x3e3   : > { %p944_p11 = scmp.lt.u32.totalorder %s942_s22, %s938_s19  ;;  %p946_p13 = scmp.lt.u32.totalorder %s938_s19, %s1131_s12 }
 0x3e4   : > { %p940_p7 = pnand %p939_p6, %p1088_p4 }
 0x3e5   : > { %p945_p12 = por %p944_p11, %p943_p10 }
 0x3e6   : > { %p941_p9 = pneg %p940_p7 }
 0x3e7   : > { %p947_p0 = por %p946_p13, %p945_p12 }
 0x3e9   : > { %p948_p1 = pnand %p947_p0, %p941_p9 }
 0x3eb   : > { %951 = shalt.err (!%p948_p1)
}
 0x3ec   : > { %858 = dma.vmem_to_hbm [thread:$0]  (%p1088_p4), %s1133_s30, 256, %s1131_s12, %s709_s15  }
 0x3ed PF: > { %p864_p2 = scmp.ge.s32.totalorder %s1002_s29, 2  ;;  %s735_s10 = sand.u32 1, %s982_s24  }
 0x3ee   : > { %s736_s16 = scalar_lea.sflag [#allocation4], %s735_s10 }
 0x3ef   : > { %p861_p3 = pnand %p864_p2, %p1095_p8 }
 0x3f1   : > { %977 = dma.done.wait (!%p861_p3), %s736_s16, 256  }
 0x3f2   : > { %979 = vsyncadd (!%p861_p3), %s736_s16, 4294967040  ;;  %s20_s29 = sadd.s32 1, %s1002_s29   ;;  %s1188_s24 = smov %s986_s25 }
 0x3f3   : > { %p17_p5 = scmp.ge.s32.totalorder %s20_s29, 4   ;;  %s1189_s25 = smov %s990_s26 }
 0x3f4   : > { %s1190_s26 = smov %s1101_s14  ;;  %s1191_s27 = smov %s998_s28 }
 0x3f5   : > { %s1192_s28 = smov %s1194_s9  ;;  %19 = sbr.rel (!%p17_p5) target bundleno = 4 (0x4), region = 95 }
 0x3fc   :  { %741 = vsyncpa [#allocation4], 1 }
 0x3fd   :  { %743 = vsyncpa [#allocation4 + $0x1], 1 }

</bundles_post_ra>
